<compile_context>
chip_gen: v7x
topology: tpu7x:2x2x1
jax: 0.10.0
libtpu: 0.0.40
codegen_flags: <defaults>
</compile_context>

<pallas_src>
import math

import jax
import jax.numpy as jnp
from jax.experimental import pallas as pl
from jax.experimental.pallas import tpu as pltpu


# --------------------------------------------------------------------------------------
# helpers
# --------------------------------------------------------------------------------------
def _round_up(x, m):
    return ((x + m - 1) // m) * m


def _choose_tile(hw, rows, bytes_per_row_pixel, max_lanes=2048, budget_bytes=512 * 1024):
    """Lane-tile size: multiple of 128, <= max_lanes, minimal padding waste."""
    cap = max_lanes
    while cap > 128 and rows * cap * bytes_per_row_pixel > budget_bytes:
        cap //= 2
    hw128 = _round_up(hw, 128)
    if hw128 <= cap:
        return hw128
    n_tiles = -(-hw128 // cap)
    return _round_up(-(-hw128 // n_tiles), 128)


_COMPILER_PARAMS = pltpu.CompilerParams(
    dimension_semantics=("parallel", "arbitrary"),
    vmem_limit_bytes=32 * 1024 * 1024,
)


# --------------------------------------------------------------------------------------
# Pallas kernels
# --------------------------------------------------------------------------------------
def _make_label_stats_kernel(has_pad):
    """Softmax + integer-label stats: tp, prob_sum, vol per class and CE sum per batch."""

    def kernel(logits_ref, labels_ref, tp_ref, s_ref, vol_ref, ce_ref):
        t = pl.program_id(1)

        @pl.when(t == 0)
        def _():
            tp_ref[...] = jnp.zeros_like(tp_ref)
            s_ref[...] = jnp.zeros_like(s_ref)
            vol_ref[...] = jnp.zeros_like(vol_ref)
            ce_ref[...] = jnp.zeros_like(ce_ref)

        logits = logits_ref[0].astype(jnp.float32)      # (C, T) upcast in-VMEM
        labels = labels_ref[0]                          # (1, T) int32, -1 on padding
        c, tl = logits.shape

        # softmax over the channel (sublane) axis
        m = jnp.max(logits, axis=0, keepdims=True)      # (1, T)
        e = jnp.exp(logits - m)                         # (C, T)
        denom = jnp.sum(e, axis=0, keepdims=True)       # (1, T)
        probs = e * pl.reciprocal(denom, approx=True)   # (C, T), EUP reciprocal

        # one-hot as a boolean mask (padding label -1 never matches any channel)
        onehot_mask = jax.lax.broadcasted_iota(jnp.int32, (c, tl), 0) == labels

        tp_part = jnp.sum(jnp.where(onehot_mask, probs, 0.0), axis=-1, keepdims=True)
        vol_part = jnp.sum(onehot_mask.astype(jnp.float32), axis=-1, keepdims=True)

        # per-pixel cross-entropy: logsumexp - logit[target]
        lse = m + jnp.log(denom)                                              # (1, T)
        tgt_logit = jnp.sum(jnp.where(onehot_mask, logits, 0.0), axis=0, keepdims=True)
        pix_ce = lse - tgt_logit                                              # (1, T)

        if has_pad:
            valid = labels >= 0                                               # (1, T)
            s_part = jnp.sum(jnp.where(valid, probs, 0.0), axis=-1, keepdims=True)
            ce_part = jnp.sum(jnp.where(valid, pix_ce, 0.0), axis=-1, keepdims=True)
        else:
            s_part = jnp.sum(probs, axis=-1, keepdims=True)
            ce_part = jnp.sum(pix_ce, axis=-1, keepdims=True)

        tp_ref[0] = tp_ref[0] + tp_part
        s_ref[0] = s_ref[0] + s_part
        vol_ref[0] = vol_ref[0] + vol_part
        ce_ref[0] = ce_ref[0] + ce_part

    return kernel


def _make_dense_stats_kernel(total_hw, has_pad):
    """Softmax + dense float target stats (exclusion loss path): tp, prob_sum, vol."""

    def kernel(logits_ref, gt_ref, tp_ref, s_ref, vol_ref):
        t = pl.program_id(1)

        @pl.when(t == 0)
        def _():
            tp_ref[...] = jnp.zeros_like(tp_ref)
            s_ref[...] = jnp.zeros_like(s_ref)
            vol_ref[...] = jnp.zeros_like(vol_ref)

        logits = logits_ref[0].astype(jnp.float32)      # (C, T)
        gt = gt_ref[0].astype(jnp.float32)              # (C, T) (padded with zeros)
        c, tl = logits.shape

        m = jnp.max(logits, axis=0, keepdims=True)
        e = jnp.exp(logits - m)
        denom = jnp.sum(e, axis=0, keepdims=True)
        probs = e * pl.reciprocal(denom, approx=True)

        if has_pad:
            lane = jax.lax.broadcasted_iota(jnp.int32, (1, tl), 1)
            valid = (t * tl + lane) < total_hw
            probs_for_sum = jnp.where(valid, probs, 0.0)
        else:
            probs_for_sum = probs

        tp_ref[0] = tp_ref[0] + jnp.sum(probs * gt, axis=-1, keepdims=True)
        s_ref[0] = s_ref[0] + jnp.sum(probs_for_sum, axis=-1, keepdims=True)
        vol_ref[0] = vol_ref[0] + jnp.sum(gt, axis=-1, keepdims=True)

    return kernel


# --------------------------------------------------------------------------------------
# pallas_call wrappers
# --------------------------------------------------------------------------------------
def _softmax_label_stats(logits, labels):
    """tp/prob_sum/vol per (B, C) and ce_sum per (B,) from logits + integer label map."""
    b, c = logits.shape[0], logits.shape[1]
    hw = math.prod(logits.shape[2:])
    x = logits.reshape(b, c, hw)                       # keep incoming dtype (bf16 stays bf16)
    y = labels.reshape(b, 1, hw).astype(jnp.int32)

    tile = _choose_tile(hw, c, max(x.dtype.itemsize, 4))
    hw_pad = _round_up(hw, tile)
    has_pad = hw_pad != hw
    if has_pad:
        x = jnp.pad(x, ((0, 0), (0, 0), (0, hw_pad - hw)))
        y = jnp.pad(y, ((0, 0), (0, 0), (0, hw_pad - hw)), constant_values=-1)
    num_tiles = hw_pad // tile

    grid_spec = pltpu.PrefetchScalarGridSpec(
        num_scalar_prefetch=0,
        grid=(b, num_tiles),
        in_specs=[
            pl.BlockSpec((1, c, tile), lambda bi, ti: (bi, 0, ti)),
            pl.BlockSpec((1, 1, tile), lambda bi, ti: (bi, 0, ti)),
        ],
        out_specs=[
            pl.BlockSpec((1, c, 1), lambda bi, ti: (bi, 0, 0)),
            pl.BlockSpec((1, c, 1), lambda bi, ti: (bi, 0, 0)),
            pl.BlockSpec((1, c, 1), lambda bi, ti: (bi, 0, 0)),
            pl.BlockSpec((1, 1, 1), lambda bi, ti: (bi, 0, 0)),
        ],
    )
    out_shape = (
        jax.ShapeDtypeStruct((b, c, 1), jnp.float32),
        jax.ShapeDtypeStruct((b, c, 1), jnp.float32),
        jax.ShapeDtypeStruct((b, c, 1), jnp.float32),
        jax.ShapeDtypeStruct((b, 1, 1), jnp.float32),
    )
    tp, prob_sum, vol, ce_sum = pl.pallas_call(
        _make_label_stats_kernel(has_pad),
        out_shape=out_shape,
        grid_spec=grid_spec,
        compiler_params=_COMPILER_PARAMS,
    )(x, y)
    return tp[..., 0], prob_sum[..., 0], vol[..., 0], ce_sum[:, 0, 0]


def _softmax_dense_stats(logits, gt):
    """tp/prob_sum/vol per (B, C) from logits + dense float target (same shape)."""
    b, c = logits.shape[0], logits.shape[1]
    hw = math.prod(logits.shape[2:])
    x = logits.reshape(b, c, hw)
    g = gt.reshape(b, c, hw).astype(logits.dtype)      # 0/1 values: exact in bf16 too

    tile = _choose_tile(hw, c, 2 * max(x.dtype.itemsize, 4))
    hw_pad = _round_up(hw, tile)
    has_pad = hw_pad != hw
    if has_pad:
        x = jnp.pad(x, ((0, 0), (0, 0), (0, hw_pad - hw)))
        g = jnp.pad(g, ((0, 0), (0, 0), (0, hw_pad - hw)))
    num_tiles = hw_pad // tile

    grid_spec = pltpu.PrefetchScalarGridSpec(
        num_scalar_prefetch=0,
        grid=(b, num_tiles),
        in_specs=[
            pl.BlockSpec((1, c, tile), lambda bi, ti: (bi, 0, ti)),
            pl.BlockSpec((1, c, tile), lambda bi, ti: (bi, 0, ti)),
        ],
        out_specs=[
            pl.BlockSpec((1, c, 1), lambda bi, ti: (bi, 0, 0)),
            pl.BlockSpec((1, c, 1), lambda bi, ti: (bi, 0, 0)),
            pl.BlockSpec((1, c, 1), lambda bi, ti: (bi, 0, 0)),
        ],
    )
    out_shape = (
        jax.ShapeDtypeStruct((b, c, 1), jnp.float32),
        jax.ShapeDtypeStruct((b, c, 1), jnp.float32),
        jax.ShapeDtypeStruct((b, c, 1), jnp.float32),
    )
    tp, prob_sum, vol = pl.pallas_call(
        _make_dense_stats_kernel(hw, has_pad),
        out_shape=out_shape,
        grid_spec=grid_spec,
        compiler_params=_COMPILER_PARAMS,
    )(x, g)
    return tp[..., 0], prob_sum[..., 0], vol[..., 0]


# --------------------------------------------------------------------------------------
# JAX glue: SoftDiceLoss combine + task-list bookkeeping (merge_prediction / expand_gt)
# --------------------------------------------------------------------------------------
def _soft_dice_from_stats(tp, prob_sum, vol, batch_dice, do_bg, smooth):
    fp = prob_sum - tp          # sum(x * (1 - onehot))
    fn = vol - tp               # sum((1 - x) * onehot)
    if batch_dice:
        tp, fp, fn = tp.sum(0), fp.sum(0), fn.sum(0)
    dc = (2.0 * tp + smooth) / (2.0 * tp + fp + fn + smooth)
    if not do_bg:
        dc = dc[1:] if batch_dice else dc[:, 1:]
    return -jnp.mean(dc)


def _merge_prediction(net_output, cur_task, default_task):
    rows = [net_output[:, 0:1]] + [jnp.zeros_like(net_output[:, 0:1])
                                   for _ in range(len(cur_task))]
    for i, task in enumerate(default_task):
        if task in cur_task:
            j = cur_task.index(task)
            rows[j + 1] = rows[j + 1] + net_output[:, i + 1:i + 2]
        else:
            rows[0] = rows[0] + net_output[:, i + 1:i + 2]
    return jnp.concatenate(rows, axis=1)


def _expand_gt(target_onehot, cur_task, default_task):
    rows = [1.0 - target_onehot[:, 0:1]]
    for task in default_task:
        if task in cur_task:
            j = cur_task.index(task)
            rows.append(1.0 - target_onehot[:, j + 1:j + 2])
        else:
            rows.append(1.0 - target_onehot[:, 0:1])
    return jnp.concatenate(rows, axis=1)


# --------------------------------------------------------------------------------------
# DC_CE_Marginal_Exclusion_loss.forward
# --------------------------------------------------------------------------------------
def dc_ce_marginal_exclusion_loss(net_output, target, default_task, cur_task,
                                  soft_dice_kwargs=None, aggregate="sum", ex=True):
    kw = dict(batch_dice=False, do_bg=True, smooth=1.0)
    if soft_dice_kwargs:
        kw.update(soft_dice_kwargs)
    batch_dice, do_bg, smooth = kw["batch_dice"], kw["do_bg"], kw["smooth"]

    b = net_output.shape[0]
    spatial = net_output.shape[2:]
    n_pix = b * math.prod(spatial)

    def combine(ce_loss, dc_loss):
        if aggregate == "sum":
            return ce_loss + dc_loss
        if aggregate == "ce":
            return ce_loss
        if aggregate == "dc":
            return dc_loss
        raise NotImplementedError("nah son")

    if list(cur_task) == list(default_task):
        tp, ps, vol, ce_sum = _softmax_label_stats(net_output, target)
        dc_loss = _soft_dice_from_stats(tp, ps, vol, batch_dice, do_bg, smooth)
        ce_loss = jnp.sum(ce_sum) / n_pix
        return combine(ce_loss, dc_loss)

    # ---- marginal branch: merge predictions onto the current task set + exclusion ----
    n_cur = len(cur_task) + 1
    target_idx = target.reshape(b, *spatial).astype(jnp.int32)
    target_onehot = jax.nn.one_hot(target_idx, n_cur, axis=1, dtype=jnp.float32)
    merged_pre = _merge_prediction(net_output, cur_task, default_task)
    not_gt = _expand_gt(target_onehot, cur_task, default_task)

    tp, ps, vol, ce_sum = _softmax_label_stats(merged_pre, target)
    dc_loss = _soft_dice_from_stats(tp, ps, vol, batch_dice, do_bg, smooth)
    ce_loss = jnp.sum(ce_sum) / n_pix
    result = combine(ce_loss, dc_loss)

    if ex:
        tp_e, ps_e, vol_e = _softmax_dense_stats(net_output, not_gt)
        ex_loss = -_soft_dice_from_stats(tp_e, ps_e, vol_e, batch_dice, do_bg, smooth)
        result = result + 2.0 * ex_loss
    return result


# --------------------------------------------------------------------------------------
# Pure-JAX reference (mirrors the PyTorch module) for validation
# --------------------------------------------------------------------------------------
def _ref_forward(net_output, target, default_task, cur_task,
                 soft_dice_kwargs=None, aggregate="sum", ex=True):
    kw = dict(batch_dice=False, do_bg=True, smooth=1.0)
    if soft_dice_kwargs:
        kw.update(soft_dice_kwargs)
    batch_dice, do_bg, smooth = kw["batch_dice"], kw["do_bg"], kw["smooth"]

    x32 = net_output.astype(jnp.float32)
    b = x32.shape[0]
    spatial = x32.shape[2:]
    axes = tuple(range(2, x32.ndim))

    def soft_dice_dense(logits, gt):
        x = jax.nn.softmax(logits, axis=1)
        tp = jnp.sum(x * gt, axis=axes)
        fp = jnp.sum(x * (1.0 - gt), axis=axes)
        fn = jnp.sum((1.0 - x) * gt, axis=axes)
        if batch_dice:
            tp, fp, fn = tp.sum(0), fp.sum(0), fn.sum(0)
        dc = (2.0 * tp + smooth) / (2.0 * tp + fp + fn + smooth)
        if not do_bg:
            dc = dc[1:] if batch_dice else dc[:, 1:]
        return -jnp.mean(dc)

    def one_hot_of(labels, depth):
        return jax.nn.one_hot(labels.reshape(b, *spatial).astype(jnp.int32),
                              depth, axis=1, dtype=jnp.float32)

    def dice_from_labels(logits, labels):
        return soft_dice_dense(logits, one_hot_of(labels, logits.shape[1]))

    def ce_from_labels(logits, labels):
        logp = jax.nn.log_softmax(logits, axis=1)
        oh = one_hot_of(labels, logits.shape[1])
        return -jnp.mean(jnp.sum(logp * oh, axis=1))

    def combine(ce_loss, dc_loss):
        if aggregate == "sum":
            return ce_loss + dc_loss
        if aggregate == "ce":
            return ce_loss
        if aggregate == "dc":
            return dc_loss
        raise NotImplementedError("nah son")

    if list(cur_task) == list(default_task):
        return combine(ce_from_labels(x32, target), dice_from_labels(x32, target))

    n_cur = len(cur_task) + 1
    t_oh = one_hot_of(target, n_cur)
    merged = _merge_prediction(x32, cur_task, default_task)
    not_gt = _expand_gt(t_oh, cur_task, default_task)
    result = combine(ce_from_labels(merged, target), dice_from_labels(merged, target))
    if ex:
        result = result + 2.0 * (-soft_dice_dense(x32, not_gt))
    return result


# --------------------------------------------------------------------------------------
# demo / self-test
# --------------------------------------------------------------------------------------
if __name__ == "__main__":
    key = jax.random.PRNGKey(0)
    k1, k2, k3, k4 = jax.random.split(key, 4)

    default_task = ["task_a", "task_b", "task_c"]        # background + 3 foreground classes
    C = len(default_task) + 1

    # Branch 1: cur_task == default_task (plain Dice + CE); HW = 2304 -> two 1152-lane tiles.
    B, H, W = 2, 48, 48
    logits1 = jax.random.normal(k1, (B, C, H, W), dtype=jnp.float32)
    labels1 = jax.random.randint(k2, (B, 1, H, W), 0, C, dtype=jnp.int32)
    loss1 = jax.block_until_ready(
        dc_ce_marginal_exclusion_loss(logits1, labels1, default_task, default_task))
    ref1 = float(_ref_forward(logits1, labels1, default_task, default_task))
    assert abs(float(loss1) - ref1) < 5e-3 * max(1.0, abs(ref1)), (float(loss1), ref1)

    # Branch 2: partial task list (marginal merge + exclusion); HW = 225 -> padded 256-lane tile.
    cur_task = ["task_b"]
    n_cur = len(cur_task) + 1
    H2, W2 = 15, 15
    logits2 = jax.random.normal(k3, (B, C, H2, W2), dtype=jnp.float32)
    labels2 = jax.random.randint(k4, (B, 1, H2, W2), 0, n_cur, dtype=jnp.int32)
    loss2 = jax.block_until_ready(
        dc_ce_marginal_exclusion_loss(logits2, labels2, default_task, cur_task))
    ref2 = float(_ref_forward(logits2, labels2, default_task, cur_task))
    assert abs(float(loss2) - ref2) < 5e-3 * max(1.0, abs(ref2)), (float(loss2), ref2)

    print("KERNEL_OK")
</pallas_src>

<mosaic_0001>
module attributes {stable_mosaic.version = 11 : i64} {
  func.func @kernel(%arg0: i32, %arg1: i32, %arg2: memref<1x4x1152xf32, #tpu.memory_space<vmem>>, %arg3: memref<1x1x1152xi32, #tpu.memory_space<vmem>>, %arg4: memref<1x4x1xf32, #tpu.memory_space<vmem>>, %arg5: memref<1x4x1xf32, #tpu.memory_space<vmem>>, %arg6: memref<1x4x1xf32, #tpu.memory_space<vmem>>, %arg7: memref<1x1x1xf32, #tpu.memory_space<vmem>>) attributes {dimension_semantics = [#tpu.dimension_semantics<parallel>, #tpu.dimension_semantics<arbitrary>], iteration_bounds = array<i64: 2, 2>, scalar_prefetch = 0 : i64, scratch_operands = 0 : i64, tpu.core_type = #tpu.core_type<tc>, window_params = [{transform_indices = @transform_0, window_bounds = array<i64: 1, 4, 1152>}, {transform_indices = @transform_1, window_bounds = array<i64: 1, 1, 1152>}, {transform_indices = @transform_2, window_bounds = array<i64: 1, 4, 1>}, {transform_indices = @transform_3, window_bounds = array<i64: 1, 4, 1>}, {transform_indices = @transform_4, window_bounds = array<i64: 1, 4, 1>}, {transform_indices = @transform_5, window_bounds = array<i64: 1, 1, 1>}]} {
    %c0_i32 = arith.constant 0 : i32
    %0 = arith.cmpi eq, %arg1, %c0_i32 : i32
    %1 = arith.extui %0 : i1 to i32
    %c0_i32_0 = arith.constant 0 : i32
    %2 = arith.cmpi ne, %1, %c0_i32_0 : i32
    scf.if %2 {
      %cst_38 = arith.constant 0.000000e+00 : f32
      %63 = vector.broadcast %cst_38 : f32 to vector<1x4x1xf32>
      %c0_39 = arith.constant 0 : index
      %c0_40 = arith.constant 0 : index
      %c0_41 = arith.constant 0 : index
      %64 = vector.load %arg4[%c0_39, %c0_40, %c0_41] : memref<1x4x1xf32, #tpu.memory_space<vmem>>, vector<1x4x1xf32>
      tpu.vector_store %arg4[%c0_39, %c0_40, %c0_41], %63 {strides = array<i32>} : memref<1x4x1xf32, #tpu.memory_space<vmem>>, vector<1x4x1xf32>,
      %cst_42 = arith.constant 0.000000e+00 : f32
      %65 = vector.broadcast %cst_42 : f32 to vector<1x4x1xf32>
      %c0_43 = arith.constant 0 : index
      %c0_44 = arith.constant 0 : index
      %c0_45 = arith.constant 0 : index
      %66 = vector.load %arg5[%c0_43, %c0_44, %c0_45] : memref<1x4x1xf32, #tpu.memory_space<vmem>>, vector<1x4x1xf32>
      tpu.vector_store %arg5[%c0_43, %c0_44, %c0_45], %65 {strides = array<i32>} : memref<1x4x1xf32, #tpu.memory_space<vmem>>, vector<1x4x1xf32>,
      %cst_46 = arith.constant 0.000000e+00 : f32
      %67 = vector.broadcast %cst_46 : f32 to vector<1x4x1xf32>
      %c0_47 = arith.constant 0 : index
      %c0_48 = arith.constant 0 : index
      %c0_49 = arith.constant 0 : index
      %68 = vector.load %arg6[%c0_47, %c0_48, %c0_49] : memref<1x4x1xf32, #tpu.memory_space<vmem>>, vector<1x4x1xf32>
      tpu.vector_store %arg6[%c0_47, %c0_48, %c0_49], %67 {strides = array<i32>} : memref<1x4x1xf32, #tpu.memory_space<vmem>>, vector<1x4x1xf32>,
      %cst_50 = arith.constant 0.000000e+00 : f32
      %69 = vector.broadcast %cst_50 : f32 to vector<1x1x1xf32>
      %c0_51 = arith.constant 0 : index
      %c0_52 = arith.constant 0 : index
      %c0_53 = arith.constant 0 : index
      %70 = vector.load %arg7[%c0_51, %c0_52, %c0_53] : memref<1x1x1xf32, #tpu.memory_space<vmem>>, vector<1x1x1xf32>
      tpu.vector_store %arg7[%c0_51, %c0_52, %c0_53], %69 {strides = array<i32>} : memref<1x1x1xf32, #tpu.memory_space<vmem>>, vector<1x1x1xf32>,
    } else {
    }
    %c0 = arith.constant 0 : index
    %c0_1 = arith.constant 0 : index
    %c0_2 = arith.constant 0 : index
    %3 = vector.load %arg2[%c0, %c0_1, %c0_2] : memref<1x4x1152xf32, #tpu.memory_space<vmem>>, vector<1x4x1152xf32>
    %4 = vector.shape_cast %3 : vector<1x4x1152xf32> to vector<4x1152xf32>
    %c0_3 = arith.constant 0 : index
    %c0_4 = arith.constant 0 : index
    %c0_5 = arith.constant 0 : index
    %5 = vector.load %arg3[%c0_3, %c0_4, %c0_5] : memref<1x1x1152xi32, #tpu.memory_space<vmem>>, vector<1x1x1152xi32>
    %6 = vector.shape_cast %5 : vector<1x1x1152xi32> to vector<1x1152xi32>
    %cst = arith.constant dense<0xFF800000> : vector<1152xf32>
    %7 = vector.multi_reduction <maximumf>, %4, %cst [0] : vector<4x1152xf32> to vector<1152xf32>
    %8 = vector.shape_cast %7 : vector<1152xf32> to vector<1x1152xf32>
    %9 = vector.broadcast %8 : vector<1x1152xf32> to vector<4x1152xf32>
    %10 = arith.subf %4, %9 : vector<4x1152xf32>
    %11 = math.exp %10 : vector<4x1152xf32>
    %cst_6 = arith.constant dense<0.000000e+00> : vector<1152xf32>
    %12 = vector.multi_reduction <add>, %11, %cst_6 [0] : vector<4x1152xf32> to vector<1152xf32>
    %13 = vector.shape_cast %12 : vector<1152xf32> to vector<1x1152xf32>
    %14 = tpu.reciprocal %13 {approx = true} : vector<1x1152xf32> -> vector<1x1152xf32>
    %15 = vector.broadcast %14 : vector<1x1152xf32> to vector<4x1152xf32>
    %16 = arith.mulf %11, %15 : vector<4x1152xf32>
    %17 = tpu.iota {dimensions = array<i32: 0>} : vector<4x1152xi32>
    %18 = vector.broadcast %6 : vector<1x1152xi32> to vector<4x1152xi32>
    %19 = arith.cmpi eq, %17, %18 : vector<4x1152xi32>
    %cst_7 = arith.constant 0.000000e+00 : f32
    %20 = vector.broadcast %cst_7 : f32 to vector<4x1152xf32>
    %21 = arith.select %19, %16, %20 : vector<4x1152xi1>, vector<4x1152xf32>
    %cst_8 = arith.constant dense<0.000000e+00> : vector<4xf32>
    %22 = vector.multi_reduction <add>, %21, %cst_8 [1] : vector<4x1152xf32> to vector<4xf32>
    %23 = vector.shape_cast %22 : vector<4xf32> to vector<4x1xf32>
    %24 = arith.extui %19 : vector<4x1152xi1> to vector<4x1152xi32>
    %25 = arith.sitofp %24 : vector<4x1152xi32> to vector<4x1152xf32>
    %cst_9 = arith.constant dense<0.000000e+00> : vector<4xf32>
    %26 = vector.multi_reduction <add>, %25, %cst_9 [1] : vector<4x1152xf32> to vector<4xf32>
    %27 = vector.shape_cast %26 : vector<4xf32> to vector<4x1xf32>
    %28 = math.log %13 : vector<1x1152xf32>
    %29 = arith.addf %8, %28 : vector<1x1152xf32>
    %cst_10 = arith.constant 0.000000e+00 : f32
    %30 = vector.broadcast %cst_10 : f32 to vector<4x1152xf32>
    %31 = arith.select %19, %4, %30 : vector<4x1152xi1>, vector<4x1152xf32>
    %cst_11 = arith.constant dense<0.000000e+00> : vector<1152xf32>
    %32 = vector.multi_reduction <add>, %31, %cst_11 [0] : vector<4x1152xf32> to vector<1152xf32>
    %33 = vector.shape_cast %32 : vector<1152xf32> to vector<1x1152xf32>
    %34 = arith.subf %29, %33 : vector<1x1152xf32>
    %cst_12 = arith.constant dense<0.000000e+00> : vector<4xf32>
    %35 = vector.multi_reduction <add>, %16, %cst_12 [1] : vector<4x1152xf32> to vector<4xf32>
    %36 = vector.shape_cast %35 : vector<4xf32> to vector<4x1xf32>
    %cst_13 = arith.constant dense<0.000000e+00> : vector<1xf32>
    %37 = vector.multi_reduction <add>, %34, %cst_13 [1] : vector<1x1152xf32> to vector<1xf32>
    %38 = vector.shape_cast %37 : vector<1xf32> to vector<1x1xf32>
    %c0_14 = arith.constant 0 : index
    %c0_15 = arith.constant 0 : index
    %c0_16 = arith.constant 0 : index
    %39 = vector.load %arg4[%c0_14, %c0_15, %c0_16] : memref<1x4x1xf32, #tpu.memory_space<vmem>>, vector<1x4x1xf32>
    %40 = vector.shape_cast %39 : vector<1x4x1xf32> to vector<4x1xf32>
    %41 = arith.addf %40, %23 : vector<4x1xf32>
    %c0_17 = arith.constant 0 : index
    %c0_18 = arith.constant 0 : index
    %c0_19 = arith.constant 0 : index
    %42 = vector.load %arg4[%c0_17, %c0_18, %c0_19] : memref<1x4x1xf32, #tpu.memory_space<vmem>>, vector<1x4x1xf32>
    %43 = vector.shape_cast %42 : vector<1x4x1xf32> to vector<4x1xf32>
    %44 = vector.shape_cast %41 : vector<4x1xf32> to vector<1x4x1xf32>
    tpu.vector_store %arg4[%c0_17, %c0_18, %c0_19], %44 {strides = array<i32>} : memref<1x4x1xf32, #tpu.memory_space<vmem>>, vector<1x4x1xf32>,
    %c0_20 = arith.constant 0 : index
    %c0_21 = arith.constant 0 : index
    %c0_22 = arith.constant 0 : index
    %45 = vector.load %arg5[%c0_20, %c0_21, %c0_22] : memref<1x4x1xf32, #tpu.memory_space<vmem>>, vector<1x4x1xf32>
    %46 = vector.shape_cast %45 : vector<1x4x1xf32> to vector<4x1xf32>
    %47 = arith.addf %46, %36 : vector<4x1xf32>
    %c0_23 = arith.constant 0 : index
    %c0_24 = arith.constant 0 : index
    %c0_25 = arith.constant 0 : index
    %48 = vector.load %arg5[%c0_23, %c0_24, %c0_25] : memref<1x4x1xf32, #tpu.memory_space<vmem>>, vector<1x4x1xf32>
    %49 = vector.shape_cast %48 : vector<1x4x1xf32> to vector<4x1xf32>
    %50 = vector.shape_cast %47 : vector<4x1xf32> to vector<1x4x1xf32>
    tpu.vector_store %arg5[%c0_23, %c0_24, %c0_25], %50 {strides = array<i32>} : memref<1x4x1xf32, #tpu.memory_space<vmem>>, vector<1x4x1xf32>,
    %c0_26 = arith.constant 0 : index
    %c0_27 = arith.constant 0 : index
    %c0_28 = arith.constant 0 : index
    %51 = vector.load %arg6[%c0_26, %c0_27, %c0_28] : memref<1x4x1xf32, #tpu.memory_space<vmem>>, vector<1x4x1xf32>
    %52 = vector.shape_cast %51 : vector<1x4x1xf32> to vector<4x1xf32>
    %53 = arith.addf %52, %27 : vector<4x1xf32>
    %c0_29 = arith.constant 0 : index
    %c0_30 = arith.constant 0 : index
    %c0_31 = arith.constant 0 : index
    %54 = vector.load %arg6[%c0_29, %c0_30, %c0_31] : memref<1x4x1xf32, #tpu.memory_space<vmem>>, vector<1x4x1xf32>
    %55 = vector.shape_cast %54 : vector<1x4x1xf32> to vector<4x1xf32>
    %56 = vector.shape_cast %53 : vector<4x1xf32> to vector<1x4x1xf32>
    tpu.vector_store %arg6[%c0_29, %c0_30, %c0_31], %56 {strides = array<i32>} : memref<1x4x1xf32, #tpu.memory_space<vmem>>, vector<1x4x1xf32>,
    %c0_32 = arith.constant 0 : index
    %c0_33 = arith.constant 0 : index
    %c0_34 = arith.constant 0 : index
    %57 = vector.load %arg7[%c0_32, %c0_33, %c0_34] : memref<1x1x1xf32, #tpu.memory_space<vmem>>, vector<1x1x1xf32>
    %58 = vector.shape_cast %57 : vector<1x1x1xf32> to vector<1x1xf32>
    %59 = arith.addf %58, %38 : vector<1x1xf32>
    %c0_35 = arith.constant 0 : index
    %c0_36 = arith.constant 0 : index
    %c0_37 = arith.constant 0 : index
    %60 = vector.load %arg7[%c0_35, %c0_36, %c0_37] : memref<1x1x1xf32, #tpu.memory_space<vmem>>, vector<1x1x1xf32>
    %61 = vector.shape_cast %60 : vector<1x1x1xf32> to vector<1x1xf32>
    %62 = vector.shape_cast %59 : vector<1x1xf32> to vector<1x1x1xf32>
    tpu.vector_store %arg7[%c0_35, %c0_36, %c0_37], %62 {strides = array<i32>} : memref<1x1x1xf32, #tpu.memory_space<vmem>>, vector<1x1x1xf32>,
    return
  }
  func.func @transform_0(%arg0: i32, %arg1: i32) -> (i32, i32, i32) {
    %c0_i32 = arith.constant 0 : i32
    %c0_i32_0 = arith.constant 0 : i32
    return %arg0, %c0_i32, %arg1 : i32, i32, i32
  }
  func.func @transform_1(%arg0: i32, %arg1: i32) -> (i32, i32, i32) {
    %c0_i32 = arith.constant 0 : i32
    %c0_i32_0 = arith.constant 0 : i32
    return %arg0, %c0_i32, %arg1 : i32, i32, i32
  }
  func.func @transform_2(%arg0: i32, %arg1: i32) -> (i32, i32, i32) {
    %c0_i32 = arith.constant 0 : i32
    %c0_i32_0 = arith.constant 0 : i32
    %c0_i32_1 = arith.constant 0 : i32
    return %arg0, %c0_i32, %c0_i32_0 : i32, i32, i32
  }
  func.func @transform_3(%arg0: i32, %arg1: i32) -> (i32, i32, i32) {
    %c0_i32 = arith.constant 0 : i32
    %c0_i32_0 = arith.constant 0 : i32
    %c0_i32_1 = arith.constant 0 : i32
    return %arg0, %c0_i32, %c0_i32_0 : i32, i32, i32
  }
  func.func @transform_4(%arg0: i32, %arg1: i32) -> (i32, i32, i32) {
    %c0_i32 = arith.constant 0 : i32
    %c0_i32_0 = arith.constant 0 : i32
    %c0_i32_1 = arith.constant 0 : i32
    return %arg0, %c0_i32, %c0_i32_0 : i32, i32, i32
  }
  func.func @transform_5(%arg0: i32, %arg1: i32) -> (i32, i32, i32) {
    %c0_i32 = arith.constant 0 : i32
    %c0_i32_0 = arith.constant 0 : i32
    %c0_i32_1 = arith.constant 0 : i32
    return %arg0, %c0_i32, %c0_i32_0 : i32, i32, i32
  }
}

</mosaic_0001>

<bundles_post_ra>
// kernel: tpu_custom_call.1
= control target key start
LH: loop header
LB: loop body
LE: loop exit
PB: predicated region body
PF: predicated region fallthrough
CT: control target
= control target key end

     0   :  { %11 = vsyncpa [#allocation3], 0  ;;  %s1942_s0 = inlined_call_operand.hbm [shape: f32[2,4,2304], index: 0, kind: input, shape index: {}]   ;;  %s1943_s1 = inlined_call_operand.hbm [shape: s32[2,1,2304], index: 1, kind: input, shape index: {}]   ;;  %s1944_s2 = inlined_call_operand.vmem [shape: f32[2,4,1], index: 2, kind: output, shape index: {0}]   ;;  %s1945_s3 = inlined_call_operand.vmem [shape: f32[2,4,1], index: 3, kind: output, shape index: {1}]   ;;  %s1946_s4 = inlined_call_operand.vmem [shape: f32[2,4,1], index: 4, kind: output, shape index: {2}]   ;;  %s1947_s5 = inlined_call_operand.vmem [shape: f32[2,1,1], index: 5, kind: output, shape index: {3}]  }
   0x1   :  { %13 = vsyncpa [#allocation3 + $0x1], 0 }
   0x2   :  { %14 = vsyncpa [#allocation5], 0 }
   0x3   :  { %16 = vsyncpa [#allocation5 + $0x1], 0  ;;  %s1349_s18 = smov 0   ;;  %s1351_s19 = smov 0  }
   0x4   :  { %s1353_s20 = smov 0   ;;  %s1355_s21 = smov 0  }
   0x5   :  { %s1357_s22 = smov 0   ;;  %s1359_s23 = smov 0  }
   0x6   :  { %s1361_s24 = smov 0   ;;  %s1363_s25 = smov 0  }
   0x7 LB: > { %s1026_s26 = sadd.s32 4294967295, %s1313_s25   ;;  %s31_s27 = sadd.s32 1, %s1305_s23  ;;  %s1313_s25 = sphi %s1363_s25, %s22_s25   ;;  %s1309_s24 = sphi %s1361_s24, %s1970_s24   ;;  %s1305_s23 = sphi %s1359_s23, %s1969_s23   ;;  %s1301_s22 = sphi %s1357_s22, %s1968_s22   ;;  %s1297_s21 = sphi %s1355_s21, %s1967_s21   ;;  %s1293_s20 = sphi %s1353_s20, %s1966_s20   ;;  %s1289_s19 = sphi %s1351_s19, %s1965_s19   ;;  %s1285_s18 = sphi %s1349_s18, %s1964_s18  }
   0x8   : > { %p32_p0 = scmp.ge.s32.totalorder %s31_s27, 2  ;;  %s34_s28 = sadd.s32 1, %s1309_s24 }
   0x9   : > { %s43_s29 = sadd.s32 1, %s1293_s20  ;;  %p50_p1 = scmp.ne.s32.totalorder %s1293_s20, %s1289_s19 }
   0xa   : > { %s1972_s27 = smov (%p32_p0, %s31_s27), 0  ;;  %s1974_s28 = smov (!%p32_p0, %s34_s28), %s1309_s24 }
   0xb   : > { %s39_s30 = ssub.s32 %s1305_s23, %s1972_s27  ;;  %p51_p2 = scmp.eq.s32.totalorder %s1313_s25, 0 }
   0xc   : > { %p36_p3 = scmp.ge.s32.totalorder %s1974_s28, 2  ;;  %p56_p4 = scmp.ne.s32.totalorder %s1289_s19, %s1285_s18 }
   0xd   : > { %p52_p5 = por %p51_p2, %p50_p1  ;;  %p57_p6 = scmp.eq.s32.totalorder %s1026_s26, 0 }
   0xe   : > { %s1976_s28 = smov (%p36_p3, %s1974_s28), 0  ;;  %p1066_p8 = scmp.lt.s32.totalorder %s1313_s25, 4 }
   0xf   : > { %p1402_p7 = por %p57_p6, %p56_p4  ;;  %s38_s7 = ssub.s32 %s1309_s24, %s1976_s28 }
  0x10   : > { %s40_s8 = sor.u32 %s39_s30, %s38_s7  ;;  %s1410_s9 = sand.u32 1, %s1293_s20  }
  0x11   : > { %s1951_s6 = scalar_select %p1402_p7, 1, 0 }
  0x12   : > { %p41_p9 = scmp.eq.s32.totalorder %s40_s8, 0  ;;  %s1049_s10 = smul.u32 36, %s1410_s9 }
  0x13   : > { %p1413_p10 = pnand %p1066_p8, %p52_p5  ;;  %s217_s13 = smul.u32 9, %s1305_s23 }
  0x14   : > { %s1418_s12 = scalar_select %p41_p9, %s1293_s20, %s43_s29  }
  0x15   : > { %s1050_s14 = smul.u32 18, %s1309_s24  ;;  %s216_s15 = scalar_lea.vmem [#allocation2], %s1049_s10 }
  0x16   : > { %s226_s16 = sshll.u32 %s216_s15, 4  ;;  %s213_s29 = scalar_lea.sflag [#allocation3], %s1410_s9  ;;  %s1422_s16 = int_to_ptr.vmem [resolvable:$true] %s226_s16 }
  0x17   : > { %s1424_s17 = sadd.s32 %s1050_s14, %s217_s13  ;;  %p1185_p0 = pneg %p1413_p10 }
  0x18   : > { %s1030_s18 = sshll.u32 %s1424_s17, 6  ;;  %s1188_s14 = scalar_lea.hbm %s1942_s0, 2304 }
  0x19   : > { %s1432_s7 = scalar_lea.hbm %s1942_s0, %s1030_s18 }
  0x1a   : > { %s1183_s8 = scalar_lea.hbm %s1432_s7, 576  ;;  %p1189_p3 = scmp.lt.u32.totalorder %s1432_s7, %s1942_s0 }
  0x1b   : > { %p1184_p13 = scmp.ne.s32.totalorder %s1432_s7, %s1183_s8  ;;  %p1190_p4 = scmp.lt.u32.totalorder %s1188_s14, %s1183_s8 }
  0x1c   : > { %p1192_p6 = scmp.lt.u32.totalorder %s1183_s8, %s1432_s7 }
  0x1d   : > { %p1186_p1 = pnand %p1185_p0, %p1184_p13  ;;  %p1191_p5 = por %p1190_p4, %p1189_p3 }
  0x1f   : > { %p1187_p2 = pneg %p1186_p1  ;;  %p1193_p8 = por %p1192_p6, %p1191_p5 }
  0x21   : > { %p1194_p9 = pnand %p1193_p8, %p1187_p2 }
  0x23   : > { %1197 = shalt.err (!%p1194_p9)
}
  0x24   : > { %s1198_s26 = scalar_lea.vmem %s1422_s16, 576  ;;  %s1315_s30 = smov [#allocation2]  }
  0x25   : > { %p1199_p13 = scmp.ne.s32.totalorder %s1422_s16, %s1198_s26  ;;  %s1203_s10 = sshll.u32 %s1315_s30, 4  ;;  %s1204_s10 = int_to_ptr.vmem [resolvable:$false] %s1203_s10 }
  0x26   : > { %s1205_s13 = scalar_lea.vmem %s1204_s10, 1152  ;;  %p1206_p12 = scmp.lt.s32.totalorder %s1422_s16, %s1204_s10 }
  0x27   : > { %p1201_p1 = pnand %p1199_p13, %p1185_p0  ;;  %p1207_p3 = scmp.lt.s32.totalorder %s1205_s13, %s1198_s26 }
  0x29   : > { %p1202_p11 = pneg %p1201_p1  ;;  %p1208_p4 = por %p1207_p3, %p1206_p12 }
  0x2b   : > { %p1209_p5 = pnand %p1208_p4, %p1202_p11 }
  0x2d   : > { %1212 = shalt.err (!%p1209_p5)
}
  0x2e   : > { %1062 = dma.hbm_to_vmem [thread:$0]  (!%p1413_p10), %s1432_s7, 576, %s1422_s16, %s213_s29  }
  0x2f   : > { %p1953_p2 = scmp.lt.s32.totalorder %s1313_s25, 5  ;;  %p1954_p6 = scmp.ge.s32.totalorder %s1313_s25, 1 }
  0x30   : > { %s1051_s14 = smul.u32 9, %s1410_s9  ;;  %s1031_s15 = sshll.u32 %s1424_s17, 4 }
  0x31   : > { %p1464_p8 = pnand %p1954_p6, %p1953_p2  ;;  %s1473_s30 = scalar_lea.hbm %s1943_s1, %s1031_s15 }
  0x32   : > { %s237_s10 = scalar_lea.vmem [#allocation4], %s1051_s14  ;;  %s234_s16 = scalar_lea.sflag [#allocation5], %s1410_s9 }
  0x33   : > { %s1955_s8 = scalar_select %p1464_p8, 1, 0 }
  0x34   : > { %s247_s13 = sshll.u32 %s237_s10, 4  ;;  %s1213_s7 = scalar_lea.hbm %s1473_s30, 144  ;;  %s248_s13 = int_to_ptr.vmem [resolvable:$true] %s247_s13 }
  0x35   : > { %p1214_p11 = scmp.ne.s32.totalorder %s1473_s30, %s1213_s7  ;;  %s1218_s18 = scalar_lea.hbm %s1943_s1, 576 }
  0x36   : > { %p1219_p13 = scmp.lt.u32.totalorder %s1473_s30, %s1943_s1  ;;  %p1220_p1 = scmp.lt.u32.totalorder %s1218_s18, %s1213_s7 }
  0x37   : > { %p1216_p12 = pnand %p1214_p11, %p1185_p0  ;;  %p1222_p4 = scmp.lt.u32.totalorder %s1213_s7, %s1473_s30 }
  0x38   : > { %p1221_p3 = por %p1220_p1, %p1219_p13 }
  0x39   : > { %p1217_p9 = pneg %p1216_p12 }
  0x3a   : > { %p1223_p5 = por %p1222_p4, %p1221_p3 }
  0x3c   : > { %p1224_p2 = pnand %p1223_p5, %p1217_p9 }
  0x3e   : > { %1227 = shalt.err (!%p1224_p2)
}
  0x3f   : > { %s1228_s9 = scalar_lea.vmem %s248_s13, 144  ;;  %s1316_s14 = smov [#allocation4]  }
  0x40   : > { %p1229_p6 = scmp.ne.s32.totalorder %s248_s13, %s1228_s9  ;;  %s1233_s10 = sshll.u32 %s1316_s14, 4  ;;  %s1234_s10 = int_to_ptr.vmem [resolvable:$false] %s1233_s10 }
  0x41   : > { %s1235_s17 = scalar_lea.vmem %s1234_s10, 288  ;;  %p1236_p7 = scmp.lt.s32.totalorder %s248_s13, %s1234_s10 }
  0x42   : > { %p1231_p11 = pnand %p1229_p6, %p1185_p0  ;;  %p1237_p8 = scmp.lt.s32.totalorder %s1235_s17, %s1228_s9 }
  0x44   : > { %p1232_p12 = pneg %p1231_p11  ;;  %p1238_p1 = por %p1237_p8, %p1236_p7 }
  0x46   : > { %p1239_p13 = pnand %p1238_p1, %p1232_p12 }
  0x48   : > { %1242 = shalt.err (!%p1239_p13)
}
  0x49   : > { %1065 = dma.hbm_to_vmem [thread:$0]  (!%p1413_p10), %s1473_s30, 144, %s248_s13, %s234_s16  }
  0x4a   : > { %p1956_p9 = scmp.ne.s32.totalorder %s1955_s8, 0 }
  0x4c   : > { %256 = sbr.rel (%p1956_p9) target bundleno = 355 (0x163), region = 28 }
  0x53   : > { %s258_s7 = sand.u32 1, %s1289_s19   ;;  %p1957_p0 = scmp.ne.s32.totalorder %s1951_s6, 0 }
  0x54   : > { %s1053_s29 = smul.u32 36, %s258_s7  ;;  %s259_s18 = scalar_lea.sflag [#allocation3], %s258_s7 }
  0x56   : > { %s1498_s15 = scalar_lea.vmem [#allocation2], %s1053_s29 }
  0x57   : > { %1276 = dma.done.wait (%p1957_p0), %s259_s18, 576  }
  0x58   : > { %1278 = vsyncadd (%p1957_p0), %s259_s18, 4294966720  ;;  %s1054_s26 = smul.u32 9, %s258_s7  ;;  %s268_s11 = scalar_lea.sflag [#allocation5], %s258_s7 }
  0x5a   : > { %s1504_s9 = scalar_lea.vmem [#allocation4], %s1054_s26 }
  0x5b   : > { %1280 = dma.done.wait (%p1957_p0), %s268_s11, 144  }
  0x5c   : > { %1282 = vsyncadd (%p1957_p0), %s268_s11, 4294967152  ;;  %p315_p7 = scmp.lt.s32.totalorder %s1301_s22, 1  ;;  %p1036_p10 = scmp.ne.s32.totalorder %s1297_s21, 0 }
  0x5d   : > { %vm334_vm0 = vcmask (!%p1036_p10), 3072   ;;  %vm338_vm1 = vcmask (!%p1036_p10), 0   ;;  %v1317_v0 = vmov (!%p1036_p10), 0.0  }
  0x5e   : > { %s1978_s22 = smov (!%p315_p7, %s1301_s22), 1  ;;  %333 = sbr.rel (%p1036_p10) target bundleno = 101 (0x65), region = 40 }
  0x5f   : > { %s1033_s8 = sshll.u32 %s1978_s22, 2  ;;  %s1515_s16 = scalar_lea.vmem %s1947_s5, %s1978_s22 }
  0x60   : > { %s1520_s17 = scalar_lea.vmem %s1944_s2, %s1033_s8  ;;  %s1525_s6 = scalar_lea.vmem %s1945_s3, %s1033_s8  ;;  %339 = vst.msk [vmem:[%s1515_s16] sm:$0x1] (!%p1036_p10), %vm338_vm1, %v1317_v0 }
  0x61   : > { %s1530_s11 = scalar_lea.vmem %s1946_s4, %s1033_s8  ;;  %335 = vst.msk [vmem:[%s1520_s17] sm:$0xf] (!%p1036_p10), %vm334_vm0, %v1317_v0  ;;  %336 = vst.msk [vmem:[%s1525_s6] sm:$0xf] (!%p1036_p10), %vm334_vm0, %v1317_v0 }
  0x62   : > { %337 = vst.msk [vmem:[%s1530_s11] sm:$0xf] (!%p1036_p10), %vm334_vm0, %v1317_v0 }
  0x65 PF: > { %v1538_v1 = vld [vmem:[%s1498_s15] sm:$0xff]  ;;  %v1541_v2 = vld [vmem:[%s1498_s15 + $0x8] sm:$0xff]  ;;  %v1544_v3 = vld [vmem:[%s1498_s15 + $0x10] sm:$0xff]  ;;  %vm359_vm2 = vcmask 1043456   ;;  %v559_v4 = vlaneseq  ;;  %vm822_vm12 = vcmask 3072   ;;  %vm832_vm13 = vcmask 0  }
  0x66   : > { %v1547_v5 = vld [vmem:[%s1498_s15 + $0x18] sm:$0xff]  ;;  %v1551_v6 = vcombine.high %v1538_v1, %v1538_v1  ;;  %v1555_v7 = vcombine.high %v1541_v2, %v1541_v2  ;;  %v1559_v8 = vcombine.high %v1544_v3, %v1544_v3  ;;  %v360_v9 = vsel %vm359_vm2, %v1538_v1, -inf  ;;  %v1582_v46 = vld [vmem:[%s1498_s15 + $0x20] sm:$0xf] }
  0x67   : > { %v1565_v10 = vcombine.high %v1547_v5, %v1547_v5  ;;  %v361_v11 = vrot.slane %v360_v9, 4  ;;  %v374_v12 = vsel %vm359_vm2, %v1541_v2, -inf  ;;  %v388_v13 = vsel %vm359_vm2, %v1544_v3, -inf }
  0x68   : > { %v367_v14 = vsel %vm359_vm2, %v1551_v6, -inf  ;;  %v375_v15 = vrot.slane %v374_v12, 4  ;;  %v381_v16 = vsel %vm359_vm2, %v1555_v7, -inf  ;;  %v389_v17 = vrot.slane %v388_v13, 4 }
  0x69   : > { %v362_v18 = vmax.f32 %v360_v9, %v361_v11  ;;  %v368_v19 = vrot.slane %v367_v14, 4  ;;  %v382_v20 = vrot.slane %v381_v16, 4  ;;  %v395_v21 = vsel %vm359_vm2, %v1559_v8, -inf }
  0x6a   : > { %v376_v22 = vmax.f32 %v374_v12, %v375_v15  ;;  %v390_v23 = vmax.f32 %v388_v13, %v389_v17  ;;  %v396_v24 = vrot.slane %v395_v21, 4  ;;  %v402_v25 = vsel %vm359_vm2, %v1547_v5, -inf  ;;  %v345_v15 = vld [vmem:[%s1504_s9] sm:$0xff] }
  0x6b   : > { %v363_v26 = vrot.slane %v362_v18, 2  ;;  %v369_v27 = vmax.f32 %v367_v14, %v368_v19  ;;  %v383_v28 = vmax.f32 %v381_v16, %v382_v20  ;;  %v403_v29 = vrot.slane %v402_v25, 4 }
  0x6c   : > { %v377_v30 = vrot.slane %v376_v22, 2  ;;  %v391_v31 = vrot.slane %v390_v23, 2  ;;  %v397_v32 = vmax.f32 %v395_v21, %v396_v24  ;;  %v409_v33 = vsel %vm359_vm2, %v1565_v10, -inf }
  0x6d   : > { %v364_v34 = vmax.f32 %v362_v18, %v363_v26  ;;  %v370_v35 = vrot.slane %v369_v27, 2  ;;  %v384_v36 = vrot.slane %v383_v28, 2  ;;  %v404_v37 = vmax.f32 %v402_v25, %v403_v29 }
  0x6e   : > { %v378_v38 = vmax.f32 %v376_v22, %v377_v30  ;;  %v392_v39 = vmax.f32 %v390_v23, %v391_v31  ;;  %v398_v40 = vrot.slane %v397_v32, 2  ;;  %v410_v41 = vrot.slane %v409_v33, 4 }
  0x6f   : > { %v365_v42 = vrot.slane %v364_v34, 1  ;;  %v371_v43 = vmax.f32 %v369_v27, %v370_v35  ;;  %v385_v44 = vmax.f32 %v383_v28, %v384_v36  ;;  %v405_v45 = vrot.slane %v404_v37, 2 }
  0x70   : > { %v379_v47 = vrot.slane %v378_v38, 1  ;;  %v393_v48 = vrot.slane %v392_v39, 1  ;;  %v399_v49 = vmax.f32 %v397_v32, %v398_v40  ;;  %v411_v50 = vmax.f32 %v409_v33, %v410_v41 }
  0x71   : > { %v1584_v51 = vmax.f32 %v364_v34, %v365_v42  ;;  %v372_v52 = vrot.slane %v371_v43, 1  ;;  %v386_v53 = vrot.slane %v385_v44, 1  ;;  %v406_v54 = vmax.f32 %v404_v37, %v405_v45 }
  0x72   : > { %v1586_v55 = vmax.f32 %v378_v38, %v379_v47  ;;  %v1588_v56 = vmax.f32 %v392_v39, %v393_v48  ;;  %v400_v57 = vrot.slane %v399_v49, 1  ;;  %v412_v58 = vrot.slane %v411_v50, 2  ;;  %v1641_v47 = vld [vmem:[%s1504_s9 + $0x8] ss:$0 sm:$0xff] }
  0x73   : > { %v1590_v59 = vmax.f32 %v371_v43, %v372_v52  ;;  %v1592_v60 = vmax.f32 %v385_v44, %v386_v53  ;;  %v407_v61 = vrot.slane %v406_v54, 1  ;;  %v416_v62 = vsel %vm359_vm2, %v1582_v46, -inf }
  0x74   : > { %v1596_v63 = vmax.f32 %v399_v49, %v400_v57  ;;  %v413_v0 = vmax.f32 %v411_v50, %v412_v58  ;;  %v417_v9 = vrot.slane %v416_v62, 4  ;;  %v1598_v11 = vshrl.u32 %v559_v4, 7 }
  0x75   : > { %v1600_v12 = vmax.f32 %v406_v54, %v407_v61  ;;  %v431_v13 = vcombine.low %v1584_v51, %v1590_v59  ;;  %v432_v14 = vcombine.low %v1586_v55, %v1592_v60 }
  0x76   : > { %v414_v16 = vrot.slane %v413_v0, 1  ;;  %v418_v17 = vmax.f32 %v416_v62, %v417_v9  ;;  %v433_v18 = vcombine.low %v1588_v56, %v1596_v63  ;;  %v563_v19 = vsub.s32 0, %v1598_v11 }
  0x77   : > { %v439_v20 = vsub.f32 %v1538_v1, %v431_v13  ;;  %v440_v4 = vsub.f32 %v1541_v2, %v432_v14  ;;  %v567_v21 = vsub.s32 1, %v1598_v11  ;;  %v571_v22 = vsub.s32 2, %v1598_v11 }
  0x78   : > { %v1614_v23 = vmax.f32 %v413_v0, %v414_v16  ;;  %v419_v24 = vrot.slane %v418_v17, 2  ;;  %v441_v25 = vsub.f32 %v1544_v3, %v433_v18  ;;  %v1617_v26 = vrot.slane %v345_v15, %v563_v19 }
  0x79   : > { %v444_v27 = vmul.f32 1.442695, %v439_v20  ;;  %v446_v28 = vmul.f32 1.442695, %v440_v4  ;;  %v1619_v29 = vrot.slane %v345_v15, %v567_v21  ;;  %v1621_v30 = vrot.slane %v345_v15, %v571_v22 }
  0x7a   : > { %1958 = vst [vmem:[#allocation8_spill] sm:$0xff] %v1614_v23  ;;  %v420_v31 = vmax.f32 %v418_v17, %v419_v24  ;;  %v434_v32 = vcombine.low %v1600_v12, %v1614_v23  ;;  %v448_v33 = vmul.f32 1.442695, %v441_v25  ;;  %v575_v34 = vsub.s32 3, %v1598_v11 }
  0x7b   : > { %1137 = vpow2.f32 %v444_v27  ;;  %v579_v35 = vsub.s32 4, %v1598_v11  ;;  %v583_v36 = vsub.s32 5, %v1598_v11  ;;  %v587_v37 = vsub.s32 6, %v1598_v11 }
  0x7c   : > { %v421_v38 = vrot.slane %v420_v31, 1  ;;  %v442_v39 = vsub.f32 %v1547_v5, %v434_v32  ;;  %1139 = vpow2.f32 %v446_v28  ;;  %v1630_v40 = vrot.slane %v345_v15, %v575_v34 }
  0x7d   : > { %1141 = vpow2.f32 %v448_v33  ;;  %v1632_v41 = vrot.slane %v345_v15, %v579_v35  ;;  %v1634_v42 = vrot.slane %v345_v15, %v583_v36  ;;  %v1636_v43 = vrot.slane %v345_v15, %v587_v37 }
  0x7e   : > { %v1638_v44 = vmax.f32 %v420_v31, %v421_v38  ;;  %v450_v45 = vmul.f32 1.442695, %v442_v39  ;;  %v591_v48 = vsub.s32 7, %v1598_v11  ;;  %vm597_vm3 = vcmp.eq.s32.totalorder %v1598_v11, %v1617_v26 }
  0x7f   : > { %vm598_vm4 = vcmp.eq.s32.totalorder %v1598_v11, %v1619_v29  ;;  %vm599_vm5 = vcmp.eq.s32.totalorder %v1598_v11, %v1621_v30  ;;  %vm600_vm6 = vcmp.eq.s32.totalorder %v1598_v11, %v1630_v40  ;;  %vm601_vm7 = vcmp.eq.s32.totalorder %v1598_v11, %v1632_v41 }
  0x80   : > { %1959 = vst [vmem:[#allocation9_spill] sm:$0xff] %v1638_v44  ;;  %v443_v49 = vsub.f32 %v1582_v46, %v1638_v44  ;;  %1143 = vpow2.f32 %v450_v45  ;;  %v1656_v50 = vrot.slane %v345_v15, %v591_v48  ;;  %vm602_vm8 = vcmp.eq.s32.totalorder %v1598_v11, %v1634_v42 }
  0x81   : > { %vm603_vm9 = vcmp.eq.s32.totalorder %v1598_v11, %v1636_v43  ;;  %vm605_vm10 = vcmp.eq.s32.totalorder %v1598_v11, %v1641_v47  ;;  %v710_v52 = vsel %vm597_vm3, %v1538_v1, 0.0  ;;  %v711_v53 = vsel %vm598_vm4, %v1551_v6, 0.0 }
  0x82   : > { %v452_v54 = vmul.f32 1.442695, %v443_v49  ;;  %vm604_vm11 = vcmp.eq.s32.totalorder %v1598_v11, %v1656_v50  ;;  %v712_v57 = vsel %vm599_vm5, %v1541_v2, 0.0  ;;  %v713_v58 = vsel %vm600_vm6, %v1555_v7, 0.0  ;;  %v820_v11 = vld [vmem:[%s1520_s17] sm:$0xf] }
  0x83   : > { %v1686_v1 = vsel %vm601_vm7, %v1544_v3, 0.0  ;;  %v1692_v6 = vsel %vm602_vm8, %v1559_v8, 0.0  ;;  %v1698_v2 = vsel %vm603_vm9, %v1547_v5, 0.0  ;;  %v1704_v7 = vsel %vm604_vm11, %v1565_v10, 0.0 }
  0x84   : > { %1145 = vpow2.f32 %v452_v54  ;;  %v719_v3 = vsel %vm359_vm2, %v710_v52, 0.0  ;;  %v726_v61 = vsel %vm359_vm2, %v711_v53, 0.0  ;;  %v1714_v8 = vsel %vm605_vm10, %v1582_v46, 0.0 }
  0x85   : > { %v1708_v62 = vpop.eup %1137  ;;  %v720_v5 = vrot.slane %v719_v3, 4  ;;  %v1717_v0 = vsel %vm359_vm2, %v712_v57, 0.0  ;;  %v1720_v9 = vsel %vm359_vm2, %v713_v58, 0.0  ;;  %v727_v15 = vrot.slane %v726_v61, 4 }
  0x86   : > { %v1722_v10 = vpop.eup %1139  ;;  %v458_v13 = vcombine.high %v1708_v62, %v1708_v62  ;;  %v466_v14 = vsel %vm359_vm2, %v1708_v62, 0.0 }
  0x87   : > { %v1729_v46 = vpop.eup %1141  ;;  %v459_v17 = vcombine.high %v1722_v10, %v1722_v10  ;;  %v467_v18 = vrot.slane %v466_v14, 4  ;;  %v480_v19 = vsel %vm359_vm2, %v1722_v10, 0.0  ;;  %v1745_v36 = vadd.f32 %v720_v5, %v719_v3 }
  0x88   : > { %v460_v4 = vcombine.high %v1729_v46, %v1729_v46  ;;  %v473_v21 = vsel %vm359_vm2, %v458_v13, 0.0  ;;  %v481_v22 = vrot.slane %v480_v19, 4  ;;  %v494_v24 = vsel %vm359_vm2, %v1729_v46, 0.0 }
  0x89   : > { %v468_v25 = vadd.f32 %v467_v18, %v466_v14  ;;  %v474_v27 = vrot.slane %v473_v21, 4  ;;  %v487_v28 = vsel %vm359_vm2, %v459_v17, 0.0  ;;  %v495_v31 = vrot.slane %v494_v24, 4 }
  0x8a   : > { %v1742_v32 = vpop.eup %1143  ;;  %v482_v33 = vadd.f32 %v481_v22, %v480_v19  ;;  %v488_v34 = vrot.slane %v487_v28, 4  ;;  %v501_v35 = vsel %vm359_vm2, %v460_v4, 0.0 }
  0x8b   : > { %v461_v37 = vcombine.high %v1742_v32, %v1742_v32  ;;  %v469_v38 = vrot.slane %v468_v25, 2  ;;  %v475_v39 = vadd.f32 %v474_v27, %v473_v21  ;;  %v496_v45 = vadd.f32 %v495_v31, %v494_v24 }
  0x8c   : > { %v483_v48 = vrot.slane %v482_v33, 2  ;;  %v489_v49 = vadd.f32 %v488_v34, %v487_v28  ;;  %v502_v52 = vrot.slane %v501_v35, 4  ;;  %v508_v53 = vsel %vm359_vm2, %v1742_v32, 0.0 }
  0x8d   : > { %v470_v54 = vadd.f32 %v469_v38, %v468_v25  ;;  %v476_v57 = vrot.slane %v475_v39, 2  ;;  %v497_v58 = vrot.slane %v496_v45, 2  ;;  %v509_v13 = vrot.slane %v508_v53, 4 }
  0x8e   : > { %v1751_v14 = vpop.eup %1145  ;;  %v484_v3 = vadd.f32 %v483_v48, %v482_v33  ;;  %v490_v5 = vrot.slane %v489_v49, 2  ;;  %v503_v17 = vadd.f32 %v502_v52, %v501_v35  ;;  %v515_v18 = vsel %vm359_vm2, %v461_v37, 0.0 }
  0x8f   : > { %v471_v19 = vrot.slane %v470_v54, 1  ;;  %v477_v4 = vadd.f32 %v476_v57, %v475_v39  ;;  %v498_v21 = vadd.f32 %v497_v58, %v496_v45  ;;  %v510_v22 = vadd.f32 %v509_v13, %v508_v53 }
  0x90   : > { %v485_v24 = vrot.slane %v484_v3, 1  ;;  %v491_v27 = vadd.f32 %v490_v5, %v489_v49  ;;  %v504_v28 = vrot.slane %v503_v17, 2  ;;  %v516_v31 = vrot.slane %v515_v18, 4 }
  0x91   : > { %v472_v34 = vadd.f32 %v471_v19, %v470_v54  ;;  %v478_v25 = vrot.slane %v477_v4, 1  ;;  %v499_v38 = vrot.slane %v498_v21, 1  ;;  %v511_v20 = vrot.slane %v510_v22, 2 }
  0x92   : > { %v492_v16 = vrot.slane %v491_v27, 1  ;;  %v505_v44 = vadd.f32 %v504_v28, %v503_v17  ;;  %v517_v23 = vadd.f32 %v516_v31, %v515_v18  ;;  %v728_v33 = vadd.f32 %v727_v15, %v726_v61 }
  0x93   : > { %v479_v48 = vadd.f32 %v478_v25, %v477_v4  ;;  %v486_v35 = vadd.f32 %v485_v24, %v484_v3  ;;  %v512_v52 = vadd.f32 %v511_v20, %v510_v22  ;;  %v522_v37 = vsel %vm359_vm2, %v1751_v14, 0.0 }
  0x94   : > { %v493_v39 = vadd.f32 %v492_v16, %v491_v27  ;;  %v506_v45 = vrot.slane %v505_v44, 1  ;;  %v518_v53 = vrot.slane %v517_v23, 2  ;;  %v523_v49 = vrot.slane %v522_v37, 4 }
  0x95   : > { %v500_v57 = vadd.f32 %v499_v38, %v498_v21  ;;  %v513_v58 = vrot.slane %v512_v52, 1  ;;  %1147 = vrcp.f32 %v472_v34  ;;  %v1960_v54 = vrot.slane %v1717_v0, 4 }
  0x96   : > { %v507_v5 = vadd.f32 %v506_v45, %v505_v44  ;;  %v519_v17 = vadd.f32 %v518_v53, %v517_v23  ;;  %v524_v61 = vadd.f32 %v523_v49, %v522_v37  ;;  %1149 = vrcp.f32 %v479_v48 }
  0x97   : > { %v735_v13 = vadd.f32 %v1960_v54, %v1717_v0  ;;  %v514_v15 = vadd.f32 %v513_v58, %v512_v52  ;;  %1151 = vrcp.f32 %v486_v35  ;;  %v747_v20 = vsel %vm359_vm2, %v1686_v1, 0.0 }
  0x98   : > { %v754_v16 = vsel %vm359_vm2, %v1692_v6, 0.0  ;;  %v520_v3 = vrot.slane %v519_v17, 1  ;;  %v525_v18 = vrot.slane %v524_v61, 2  ;;  %1153 = vrcp.f32 %v493_v39 }
  0x99   : > { %v748_v19 = vrot.slane %v747_v20, 4  ;;  %1155 = vrcp.f32 %v500_v57  ;;  %v755_v4 = vrot.slane %v754_v16, 4  ;;  %v761_v44 = vsel %vm359_vm2, %v1698_v2, 0.0 }
  0x9a   : > { %v768_v23 = vsel %vm359_vm2, %v1704_v7, 0.0  ;;  %v521_v0 = vadd.f32 %v520_v3, %v519_v17  ;;  %v526_v21 = vadd.f32 %v525_v18, %v524_v61  ;;  %1157 = vrcp.f32 %v507_v5 }
  0x9b   : > { %v1961_v1 = vrot.slane %v1720_v9, 4  ;;  %1159 = vrcp.f32 %v514_v15  ;;  %v749_v6 = vadd.f32 %v748_v19, %v747_v20  ;;  %v762_v24 = vrot.slane %v761_v44, 4 }
  0x9c   : > { %v769_v27 = vrot.slane %v768_v23, 4  ;;  %v527_v28 = vrot.slane %v526_v21, 1  ;;  %1161 = vrcp.f32 %v521_v0  ;;  %v775_v31 = vsel %vm359_vm2, %v1714_v8, 0.0 }
  0x9d   : > { %v742_v22 = vadd.f32 %v1961_v1, %v1720_v9  ;;  %v722_v2 = vrot.slane %v1745_v36, 2  ;;  %v1773_v25 = vadd.f32 %v755_v4, %v754_v16  ;;  %v1775_v7 = vadd.f32 %v762_v24, %v761_v44 }
  0x9e   : > { %v776_v38 = vrot.slane %v775_v31, 4  ;;  %1163 = vlog2.f32 %v472_v34  ;;  %v1777_v52 = vadd.f32 %v527_v28, %v526_v21  ;;  %v729_v37 = vrot.slane %v728_v33, 2 }
  0x9f   : > { %1165 = vlog2.f32 %v479_v48  ;;  %v723_v9 = vadd.f32 %v722_v2, %v1745_v36  ;;  %v1148_v45 = vpop.eup %1147  ;;  %v1780_v53 = vadd.f32 %v769_v27, %v768_v23  ;;  %v736_v49 = vrot.slane %v735_v13, 2 }
  0xa0   : > { %1167 = vlog2.f32 %v486_v35  ;;  %v743_v8 = vrot.slane %v742_v22, 2  ;;  %v1150_v58 = vpop.eup %1149  ;;  %v730_v17 = vadd.f32 %v729_v37, %v728_v33  ;;  %v750_v61 = vrot.slane %v749_v6, 2 }
  0xa1   : > { %1169 = vrcp.f32 %v1777_v52  ;;  %v724_v54 = vrot.slane %v723_v9, 1  ;;  %v1152_v20 = vpop.eup %1151  ;;  %v546_v34 = vcombine.low %v1148_v45, %v1150_v58  ;;  %v737_v16 = vadd.f32 %v736_v49, %v735_v13 }
  0xa2   : > { %1171 = vlog2.f32 %v493_v39  ;;  %v744_v48 = vadd.f32 %v743_v8, %v742_v22  ;;  %v1154_v3 = vpop.eup %1153  ;;  %v1783_v36 = vadd.f32 %v776_v38, %v775_v31  ;;  %v731_v18 = vrot.slane %v730_v17, 1 }
  0xa3   : > { %1173 = vlog2.f32 %v500_v57  ;;  %v1785_v19 = vadd.f32 %v750_v61, %v749_v6  ;;  %v1156_v35 = vpop.eup %1155  ;;  %v547_v4 = vcombine.low %v1152_v20, %v1154_v3  ;;  %v554_v44 = vmul.f32 %v1708_v62, %v546_v34 }
  0xa4   : > { %1175 = vlog2.f32 %v507_v5  ;;  %v738_v23 = vrot.slane %v737_v16, 1  ;;  %v1158_v33 = vpop.eup %1157  ;;  %v1788_v21 = vadd.f32 %v724_v54, %v723_v9  ;;  %v1790_v39 = vadd.f32 %v731_v18, %v730_v17 }
  0xa5   : > { %1177 = vlog2.f32 %v514_v15  ;;  %v745_v13 = vrot.slane %v744_v48, 1  ;;  %v1160_v1 = vpop.eup %1159  ;;  %v548_v22 = vcombine.low %v1156_v35, %v1158_v33  ;;  %v555_v57 = vmul.f32 %v1722_v10, %v547_v4 }
  0xa6   : > { %v610_v24 = vcombine.high %v554_v44, %v554_v44  ;;  %v791_v6 = vsel %vm359_vm2, %v554_v44, 0.0  ;;  %v1162_v27 = vpop.eup %1161  ;;  %v618_v62 = vsel %vm597_vm3, %v554_v44, 0.0  ;;  %1179 = vlog2.f32 %v521_v0 }
  0xa7   : > { %v1797_v5 = vadd.f32 %v738_v23, %v737_v16  ;;  %v752_v15 = vrot.slane %v1785_v19, 1  ;;  %v549_v31 = vcombine.low %v1160_v1, %v1162_v27  ;;  %v556_v2 = vmul.f32 %v1729_v46, %v548_v22 }
  0xa8   : > { %v1164_v28 = vpop.eup %1163  ;;  %v611_v38 = vcombine.high %v555_v57, %v555_v57  ;;  %v792_v10 = vsel %vm359_vm2, %v610_v24, 0.0  ;;  %v794_v45 = vsel %vm359_vm2, %v555_v57, 0.0  ;;  %v619_v49 = vsel %vm598_vm4, %v610_v24, 0.0 }
  0xa9   : > { %v1166_v9 = vpop.eup %1165  ;;  %v793_v37 = vadd.f32 %v792_v10, %v791_v6  ;;  %v1806_v0 = vadd.f32 %v745_v13, %v744_v48  ;;  %v557_v58 = vmul.f32 %v1742_v32, %v549_v31  ;;  %v612_v54 = vcombine.high %v556_v2, %v556_v2 }
  0xaa   : > { %v1168_v8 = vpop.eup %1167  ;;  %v796_v17 = vsel %vm359_vm2, %v611_v38, 0.0  ;;  %v620_v46 = vsel %vm599_vm5, %v555_v57, 0.0  ;;  %v798_v34 = vsel %vm359_vm2, %v556_v2, 0.0  ;;  %v621_v16 = vsel %vm600_vm6, %v611_v38, 0.0 }
  0xab   : > { %v1170_v61 = vpop.eup %1169  ;;  %v795_v20 = vadd.f32 %v794_v45, %v793_v37  ;;  %v622_v48 = vsel %vm601_vm7, %v556_v2, 0.0  ;;  %v613_v18 = vcombine.high %v557_v58, %v557_v58  ;;  %v800_v35 = vsel %vm359_vm2, %v612_v54, 0.0 }
  0xac   : > { %v1172_v32 = vpop.eup %1171  ;;  %v558_v3 = vmul.f32 %v1170_v61, %v1751_v14  ;;  %v627_v4 = vsel %vm359_vm2, %v618_v62, 0.0  ;;  %v623_v33 = vsel %vm602_vm8, %v612_v54, 0.0  ;;  %v624_v13 = vsel %vm603_vm9, %v557_v58, 0.0 }
  0xad   : > { %v1174_v44 = vpop.eup %1173  ;;  %v797_v23 = vadd.f32 %v796_v17, %v795_v20  ;;  %v628_v1 = vsel %vm359_vm2, %v619_v49, 0.0  ;;  %v802_v14 = vsel %vm359_vm2, %v557_v58, 0.0  ;;  %v804_v57 = vsel %vm359_vm2, %v613_v18, 0.0 }
  0xae   : > { %v1176_v22 = vpop.eup %1175  ;;  %v806_v24 = vsel %vm359_vm2, %v558_v3, 0.0  ;;  %v625_v6 = vsel %vm604_vm11, %v613_v18, 0.0  ;;  %v626_v31 = vsel %vm605_vm10, %v558_v3, 0.0  ;;  %v629_v2 = vadd.f32 %v628_v1, %v627_v4 }
  0xaf   : > { %v1178_v27 = vpop.eup %1177  ;;  %v799_v62 = vadd.f32 %v798_v34, %v797_v23  ;;  %v630_v38 = vsel %vm359_vm2, %v620_v46, 0.0  ;;  %v632_v10 = vsel %vm359_vm2, %v621_v16, 0.0  ;;  %v634_v37 = vsel %vm359_vm2, %v622_v48, 0.0 }
  0xb0   : > { %v636_v45 = vsel %vm359_vm2, %v623_v33, 0.0  ;;  %v638_v49 = vsel %vm359_vm2, %v624_v13, 0.0  ;;  %v1180_v58 = vpop.eup %1179  ;;  %v631_v17 = vadd.f32 %v630_v38, %v629_v2  ;;  %v640_v61 = vsel %vm359_vm2, %v625_v6, 0.0  ;;  %v1962_v38 = vld [vmem:[#allocation8_spill] sm:$0xff] }
  0xb1   : > { %v801_v54 = vadd.f32 %v800_v35, %v799_v62  ;;  %v684_v20 = vmul.f32 0.6931472, %v1164_v28  ;;  %v686_v34 = vmul.f32 0.6931472, %v1166_v9  ;;  %v688_v18 = vmul.f32 0.6931472, %v1168_v8 }
  0xb2   : > { %v690_v3 = vmul.f32 0.6931472, %v1172_v32  ;;  %1181 = vlog2.f32 %v1777_v52  ;;  %v633_v4 = vadd.f32 %v632_v10, %v631_v17  ;;  %v692_v16 = vmul.f32 0.6931472, %v1174_v44 }
  0xb3   : > { %v803_v46 = vadd.f32 %v802_v14, %v801_v54  ;;  %v694_v23 = vmul.f32 0.6931472, %v1176_v22  ;;  %v642_v48 = vsel %vm359_vm2, %v626_v31, 0.0  ;;  %v696_v33 = vmul.f32 0.6931472, %v1178_v27 }
  0xb4   : > { %v698_v1 = vmul.f32 0.6931472, %v1180_v58  ;;  %v701_v13 = vadd.f32 %v684_v20, %v1584_v51  ;;  %v635_v62 = vadd.f32 %v634_v37, %v633_v4  ;;  %v702_v6 = vadd.f32 %v686_v34, %v1590_v59 }
  0xb5   : > { %v805_v35 = vadd.f32 %v804_v57, %v803_v46  ;;  %v703_v28 = vadd.f32 %v688_v18, %v1586_v55  ;;  %v704_v9 = vadd.f32 %v690_v3, %v1592_v60  ;;  %v705_v52 = vadd.f32 %v692_v16, %v1588_v56  ;;  %v1963_v16 = vld [vmem:[#allocation9_spill] sm:$0xff] }
  0xb6   : > { %v706_v8 = vadd.f32 %v694_v23, %v1596_v63  ;;  %v707_v32 = vadd.f32 %v696_v33, %v1600_v12  ;;  %v637_v22 = vadd.f32 %v636_v45, %v635_v62  ;;  %v753_v51 = vadd.f32 %v752_v15, %v1785_v19 }
  0xb7   : > { %v807_v44 = vadd.f32 %v806_v24, %v805_v35  ;;  %v757_v14 = vrot.slane %v1773_v25, 2  ;;  %v764_v59 = vrot.slane %v1775_v7, 2  ;;  %v771_v55 = vrot.slane %v1780_v53, 2 }
  0xb8   : > { %v778_v60 = vrot.slane %v1783_v36, 2  ;;  %v782_v56 = vsub.f32 %v701_v13, %v1788_v21  ;;  %v639_v63 = vadd.f32 %v638_v49, %v637_v22  ;;  %v783_v57 = vsub.f32 %v702_v6, %v1790_v39 }
  0xb9   : > { %808 = vadd.xlane.f32.xlu1 %v807_v44  ;;  %v758_v12 = vadd.f32 %v757_v14, %v1773_v25  ;;  %v784_v24 = vsub.f32 %v703_v28, %v1797_v5  ;;  %v765_v19 = vadd.f32 %v764_v59, %v1775_v7  ;;  %v772_v15 = vadd.f32 %v771_v55, %v1780_v53 }
  0xba   : > { %v779_v27 = vadd.f32 %v778_v60, %v1783_v36  ;;  %v785_v31 = vsub.f32 %v704_v9, %v1806_v0  ;;  %v641_v2 = vadd.f32 %v640_v61, %v639_v63  ;;  %v708_v10 = vadd.f32 %v698_v1, %v1962_v38  ;;  %v827_v38 = vld [vmem:[%s1530_s11] sm:$0xf] }
  0xbb   : > { %v759_v21 = vrot.slane %v758_v12, 1  ;;  %v810_v37 = vadd.f32 %v783_v57, %v782_v56  ;;  %v766_v49 = vrot.slane %v765_v19, 1  ;;  %v773_v25 = vrot.slane %v772_v15, 1  ;;  %v824_v57 = vld [vmem:[%s1525_s6] sm:$0xf] }
  0xbc   : > { %v1182_v45 = vpop.eup %1181  ;;  %v780_v58 = vrot.slane %v779_v27, 1  ;;  %v786_v39 = vsub.f32 %v705_v52, %v753_v51  ;;  %v643_v54 = vadd.f32 %v642_v48, %v641_v2  ;;  %v1318_v0 = vmov 0.0  }
  0xbd   : > { %v700_v5 = vmul.f32 0.6931472, %v1182_v45  ;;  %v760_v17 = vadd.f32 %v759_v21, %v758_v12  ;;  %v811_v7 = vadd.f32 %v810_v37, %v784_v24  ;;  %v767_v20 = vadd.f32 %v766_v49, %v765_v19 }
  0xbe   : > { %v774_v53 = vadd.f32 %v773_v25, %v772_v15  ;;  %644 = vadd.xlane.f32.xlu0 %v643_v54  ;;  %v1038_v61 = vsel %vm597_vm3, 1.0, %v1318_v0  ;;  %v1039_v18 = vsel %vm598_vm4, 1.0, %v1318_v0  ;;  %v781_v3 = vadd.f32 %v780_v58, %v779_v27  ;;  %v830_v27 = vld [vmem:[%s1515_s16] sm:$0x1] }
  0xbf   : > { %v787_v36 = vsub.f32 %v706_v8, %v760_v17  ;;  %v812_v34 = vadd.f32 %v811_v7, %v785_v31  ;;  %v1040_v4 = vsel %vm599_vm5, 1.0, %v1318_v0  ;;  %v709_v23 = vadd.f32 %v700_v5, %v1963_v16 }
  0xc0   : > { %v789_v46 = vsub.f32 %v708_v10, %v774_v53  ;;  %v788_v48 = vsub.f32 %v707_v32, %v767_v20  ;;  %v1041_v1 = vsel %vm600_vm6, 1.0, %v1318_v0  ;;  %v664_v26 = vsel %vm359_vm2, %v1038_v61, 0.0 }
  0xc1   : > { %v813_v33 = vadd.f32 %v812_v34, %v786_v39  ;;  %v665_v13 = vsel %vm359_vm2, %v1039_v18, 0.0  ;;  %v1042_v35 = vsel %vm601_vm7, 1.0, %v1318_v0  ;;  %v667_v30 = vsel %vm359_vm2, %v1040_v4, 0.0 }
  0xc2   : > { %v666_v62 = vadd.f32 %v665_v13, %v664_v26  ;;  %v669_v6 = vsel %vm359_vm2, %v1041_v1, 0.0  ;;  %v790_v28 = vsub.f32 %v709_v23, %v781_v3  ;;  %v1043_v40 = vsel %vm602_vm8, 1.0, %v1318_v0 }
  0xc3   : > { %v814_v29 = vadd.f32 %v813_v33, %v787_v36  ;;  %v671_v8 = vsel %vm359_vm2, %v1042_v35, 0.0  ;;  %v1044_v41 = vsel %vm603_vm9, 1.0, %v1318_v0  ;;  %v673_v22 = vsel %vm359_vm2, %v1043_v40, 0.0 }
  0xc4   : > { %v668_v52 = vadd.f32 %v667_v30, %v666_v62  ;;  %v1045_v14 = vsel %vm604_vm11, 1.0, %v1318_v0  ;;  %v675_v59 = vsel %vm359_vm2, %v1044_v41, 0.0  ;;  %v1046_v43 = vsel %vm605_vm10, 1.0, %v1318_v0 }
  0xc5   : > { %v815_v9 = vadd.f32 %v814_v29, %v788_v48  ;;  %v677_v60 = vsel %vm359_vm2, %v1045_v14, 0.0  ;;  %v679_v63 = vsel %vm359_vm2, %v1046_v43, 0.0 }
  0xc6   : > { %v670_v44 = vadd.f32 %v669_v6, %v668_v52 }
  0xc7   : > { %v816_v32 = vadd.f32 %v815_v9, %v789_v46 }
  0xc8   : > { %v672_v42 = vadd.f32 %v671_v8, %v670_v44 }
  0xc9   : > { %v817_v51 = vadd.f32 %v816_v32, %v790_v28 }
  0xca   : > { %v674_v55 = vadd.f32 %v673_v22, %v672_v42 }
  0xcb   : > { %818 = vadd.xlane.f32.xlu1 %v817_v51 }
  0xcc   : > { %v676_v56 = vadd.f32 %v675_v59, %v674_v55 }
  0xce   : > { %v678_v50 = vadd.f32 %v677_v60, %v676_v56 }
  0xd0   : > { %v680_v12 = vadd.f32 %v679_v63, %v678_v50 }
  0xd2   : > { %681 = vadd.xlane.f32.xlu0 %v680_v12 }
 0x146   : > { %v809_v24 = vpop.xlane.xlu1 %808 }
 0x147   : > { %v825_v19 = vadd.f32 %v824_v57, %v809_v24 }
 0x149   : > { %826 = vst.msk [vmem:[%s1525_s6] sm:$0xf] %vm822_vm12, %v825_v19 }
 0x14b   : > { %v645_v47 = vpop.xlane.xlu0 %644 }
 0x14c   : > { %v821_v15 = vadd.f32 %v820_v11, %v645_v47 }
 0x14e   : > { %823 = vst.msk [vmem:[%s1520_s17] sm:$0xf] %vm822_vm12, %v821_v15 }
 0x158   : > { %v819_v31 = vpop.xlane.xlu1 %818 }
 0x159   : > { %v831_v2 = vadd.f32 %v830_v27, %v819_v31 }
 0x15b   : > { %833 = vst.msk [vmem:[%s1515_s16] sm:$0x1] %vm832_vm13, %v831_v2 }
 0x15f   : > { %v682_v10 = vpop.xlane.xlu0 %681 }
 0x160   : > { %v828_v21 = vadd.f32 %v827_v38, %v682_v10 }
 0x162   : > { %829 = vst.msk [vmem:[%s1530_s11] sm:$0xf] %vm822_vm12, %v828_v21 }
 0x163 PF: > { %s22_s25 = sadd.s32 1, %s1313_s25   ;;  %s1964_s18 = smov %s1289_s19 }
 0x164   : > { %p19_p8 = scmp.ge.s32.totalorder %s22_s25, 6   ;;  %s1965_s19 = smov %s1293_s20 }
 0x165   : > { %s1966_s20 = smov %s1418_s12  ;;  %s1967_s21 = smov %s1305_s23 }
 0x166   : > { %s1968_s22 = smov %s1309_s24  ;;  %s1969_s23 = smov %s1972_s27 }
 0x167   : > { %s1970_s24 = smov %s1976_s28  ;;  %21 = sbr.rel (!%p19_p8) target bundleno = 7 (0x7), region = 121 }
 0x16e   :  { %893 = vsyncpa [#allocation3], 1 }
 0x16f   :  { %895 = vsyncpa [#allocation3 + $0x1], 1 }
 0x170   :  { %896 = vsyncpa [#allocation5], 1 }
 0x171   :  { %898 = vsyncpa [#allocation5 + $0x1], 1 }

</bundles_post_ra>
